<compile_context>
chip_gen: v6e
topology: v6e:2x2x1
jax: 0.10.0
libtpu: 0.0.40
codegen_flags: <defaults>
</compile_context>

<pallas_src>
import jax
import jax.numpy as jnp
from jax.experimental import pallas as pl
from jax.experimental.pallas import tpu as pltpu

_LANES = 128
_VMEM_BLOCK_BUDGET = 2 * 1024 * 1024  # bytes per output block (x2 outputs x2 buffers fits everywhere)


def _encoder_broadcast_kernel(row_ref, col_ref, out_row_ref, out_col_ref):
    # row_ref:     (TR, P)   lane-aligned periodic unit of this step's rows (P is a multiple of 128)
    # col_ref:     (1, CU)   flattened column embedding (full table, resident across steps)
    # out_row_ref: (TR, CU)  row embedding tiled across columns (lane-dense)
    # out_col_ref: (TR, CU)  column embedding broadcast across rows (lane-dense)
    tr, p = row_ref.shape
    cu = out_row_ref.shape[-1]
    reps = cu // p  # static Python int

    row_unit = row_ref[...]
    if reps == 1:
        out_row_ref[...] = row_unit
    else:
        # Lane-aligned minor-dim concatenation (every operand is a multiple of 128 lanes wide).
        out_row_ref[...] = jnp.concatenate([row_unit] * reps, axis=-1)

    # Sublane broadcast of the (1, CU) column table to all TR rows of the block.
    out_col_ref[...] = jnp.broadcast_to(col_ref[...], (tr, cu))


def _choose_row_tile(R, bytes_per_row, sublane_align):
    """Largest sublane-aligned divisor of R under the VMEM block budget, keeping >=2 grid steps."""
    max_tr = max(1, _VMEM_BLOCK_BUDGET // max(1, bytes_per_row))
    if R <= sublane_align or max_tr < sublane_align:
        return R  # full-extent block (tiny row count); block == full dim satisfies tiling rules
    cap = min(R, max_tr)
    candidates = [d for d in range(sublane_align, cap + 1, sublane_align) if R % d == 0]
    if not candidates:
        return R
    multi = [d for d in candidates if R // d >= 2]  # prefer >=2 steps so v7x can use both TCs
    return max(multi) if multi else max(candidates)


def encoder_forward(row_embedding, col_embedding):
    """row_embedding: (R, 1, U); col_embedding: (1, C, U).

    Returns [row_expanded (R, C, U), col_expanded (R, C, U)], matching
    Encoder.forward's `.expand(self.dim)` semantics.
    """
    R, _, U = row_embedding.shape
    _, C, _ = col_embedding.shape
    dtype = row_embedding.dtype
    CU = C * U
    full_shape = (R, C, U)

    lane_ok = (CU % _LANES == 0) and (U % _LANES == 0 or _LANES % U == 0)
    if not lane_ok:
        # TODO(synk): unaligned units; at such shapes XLA's broadcast is the right tool.
        return [jnp.broadcast_to(row_embedding, full_shape),
                jnp.broadcast_to(col_embedding, full_shape)]

    # Build a lane-aligned periodic unit of the row table (tiny (R, P) prep; P in {U, 128}).
    row2d = row_embedding.reshape(R, U)
    if U % _LANES == 0:
        P = U
        row_unit = row2d
    else:
        P = _LANES
        row_unit = jnp.concatenate([row2d] * (_LANES // U), axis=-1)
    reps = CU // P
    if reps > 64:
        # Avoid unrolling a huge concat; fall back to XLA for extreme column counts.
        return [jnp.broadcast_to(row_embedding, full_shape),
                jnp.broadcast_to(col_embedding, full_shape)]

    col_flat = col_embedding.reshape(1, CU)

    itemsize = jnp.dtype(dtype).itemsize
    sublane_align = {4: 8, 2: 16, 1: 32}.get(itemsize, 8)
    TR = _choose_row_tile(R, CU * itemsize, sublane_align)
    grid = (R // TR,)

    out_shape2d = jax.ShapeDtypeStruct((R, CU), dtype)
    row_out, col_out = pl.pallas_call(
        _encoder_broadcast_kernel,
        grid=grid,
        in_specs=[
            pl.BlockSpec((TR, P), lambda i: (i, 0)),   # this step's rows (lane-aligned unit)
            pl.BlockSpec((1, CU), lambda i: (0, 0)),   # full column table, resident across steps
        ],
        out_specs=(
            pl.BlockSpec((TR, CU), lambda i: (i, 0)),
            pl.BlockSpec((TR, CU), lambda i: (i, 0)),
        ),
        out_shape=(out_shape2d, out_shape2d),
        compiler_params=pltpu.CompilerParams(
            dimension_semantics=("parallel",),
        ),
    )(row_unit, col_flat)

    # Free reshapes back to the module's (R, C, U) output layout.
    return [row_out.reshape(full_shape), col_out.reshape(full_shape)]


def init_encoder_params(key, input_dim, units, dtype=jnp.float32):
    """Matches Encoder.reset_par(): uniform[0,1) - 0.5."""
    k_row, k_col = jax.random.split(key)
    row_embedding = jax.random.uniform(k_row, (input_dim[0], 1, units), dtype=dtype) - 0.5
    col_embedding = jax.random.uniform(k_col, (1, input_dim[1], units), dtype=dtype) - 0.5
    return row_embedding, col_embedding


if __name__ == "__main__":
    input_dim = (16, 16)   # (rows R, cols C) -> TR=8, grid=(2,), lane width C*U=1024
    units = 64             # matches the module's global `units = 64`

    key = jax.random.PRNGKey(0)
    row_embedding, col_embedding = init_encoder_params(key, input_dim, units)

    row_exp, col_exp = encoder_forward(row_embedding, col_embedding)
    jax.block_until_ready(row_exp)
    jax.block_until_ready(col_exp)

    full = (input_dim[0], input_dim[1], units)
    ref_row = jnp.broadcast_to(row_embedding, full)
    ref_col = jnp.broadcast_to(col_embedding, full)
    assert row_exp.shape == full
    assert col_exp.shape == full
    assert bool(jnp.array_equal(row_exp, ref_row))
    assert bool(jnp.array_equal(col_exp, ref_col))

    print("KERNEL_OK")
</pallas_src>

<mosaic_0001>
module attributes {stable_mosaic.version = 11 : i64} {
  func.func @_encoder_broadcast_kernel(%arg0: i32, %arg1: memref<8x128xf32, #tpu.memory_space<vmem>>, %arg2: memref<1x1024xf32, #tpu.memory_space<vmem>>, %arg3: memref<8x1024xf32, #tpu.memory_space<vmem>>, %arg4: memref<8x1024xf32, #tpu.memory_space<vmem>>) attributes {dimension_semantics = [#tpu.dimension_semantics<parallel>], iteration_bounds = array<i64: 2>, scalar_prefetch = 0 : i64, scratch_operands = 0 : i64, tpu.core_type = #tpu.core_type<tc>, window_params = [{transform_indices = @transform_0, window_bounds = array<i64: 8, 128>}, {pipeline_mode = #tpu.pipeline_mode<synchronous>, transform_indices = @transform_1, window_bounds = array<i64: 1, 1024>}, {transform_indices = @transform_2, window_bounds = array<i64: 8, 1024>}, {transform_indices = @transform_3, window_bounds = array<i64: 8, 1024>}]} {
    %c0 = arith.constant 0 : index
    %c0_0 = arith.constant 0 : index
    %0 = vector.load %arg1[%c0, %c0_0] : memref<8x128xf32, #tpu.memory_space<vmem>>, vector<8x128xf32>
    %1 = tpu.concatenate %0, %0, %0, %0, %0, %0, %0, %0 in 1 : vector<8x128xf32>, vector<8x128xf32>, vector<8x128xf32>, vector<8x128xf32>, vector<8x128xf32>, vector<8x128xf32>, vector<8x128xf32>, vector<8x128xf32> -> vector<8x1024xf32>
    %c0_1 = arith.constant 0 : index
    %c0_2 = arith.constant 0 : index
    %2 = vector.load %arg3[%c0_1, %c0_2] : memref<8x1024xf32, #tpu.memory_space<vmem>>, vector<8x1024xf32>
    tpu.vector_store %arg3[%c0_1, %c0_2], %1 {strides = array<i32>} : memref<8x1024xf32, #tpu.memory_space<vmem>>, vector<8x1024xf32>,
    %c0_3 = arith.constant 0 : index
    %c0_4 = arith.constant 0 : index
    %3 = vector.load %arg2[%c0_3, %c0_4] : memref<1x1024xf32, #tpu.memory_space<vmem>>, vector<1x1024xf32>
    %4 = vector.shape_cast %3 : vector<1x1024xf32> to vector<1x1024xf32>
    %5 = vector.broadcast %4 : vector<1x1024xf32> to vector<8x1024xf32>
    %c0_5 = arith.constant 0 : index
    %c0_6 = arith.constant 0 : index
    %6 = vector.load %arg4[%c0_5, %c0_6] : memref<8x1024xf32, #tpu.memory_space<vmem>>, vector<8x1024xf32>
    tpu.vector_store %arg4[%c0_5, %c0_6], %5 {strides = array<i32>} : memref<8x1024xf32, #tpu.memory_space<vmem>>, vector<8x1024xf32>,
    return
  }
  func.func @transform_0(%arg0: i32) -> (i32, i32) {
    %c0_i32 = arith.constant 0 : i32
    %c0_i32_0 = arith.constant 0 : i32
    return %arg0, %c0_i32 : i32, i32
  }
  func.func @transform_1(%arg0: i32) -> (i32, i32) {
    %c0_i32 = arith.constant 0 : i32
    %c0_i32_0 = arith.constant 0 : i32
    %c0_i32_1 = arith.constant 0 : i32
    return %c0_i32, %c0_i32_0 : i32, i32
  }
  func.func @transform_2(%arg0: i32) -> (i32, i32) {
    %c0_i32 = arith.constant 0 : i32
    %c0_i32_0 = arith.constant 0 : i32
    return %arg0, %c0_i32 : i32, i32
  }
  func.func @transform_3(%arg0: i32) -> (i32, i32) {
    %c0_i32 = arith.constant 0 : i32
    %c0_i32_0 = arith.constant 0 : i32
    return %arg0, %c0_i32 : i32, i32
  }
}

</mosaic_0001>

<bundles_post_ra>
// kernel: tpu_custom_call.1
= control target key start
LH: loop header
LB: loop body
LE: loop exit
PB: predicated region body
PF: predicated region fallthrough
CT: control target
= control target key end

     0   :  { %9 = vsyncpa [#allocation3], 0  ;;  %s898_s0 = inlined_call_operand.hbm [shape: f32[16,128], index: 0, kind: input, shape index: {}]   ;;  %s899_s1 = inlined_call_operand.hbm [shape: f32[1,1024], index: 1, kind: input, shape index: {}]   ;;  %s900_s2 = inlined_call_operand.hbm [shape: f32[16,1024], index: 2, kind: output, shape index: {0}]   ;;  %s901_s3 = inlined_call_operand.hbm [shape: f32[16,1024], index: 3, kind: output, shape index: {1}]  }
   0x1   :  { %11 = vsyncpa [#allocation3 + $0x1], 0 }
   0x2   :  { %12 = vsyncpa [#allocation6], 0 }
   0x3   :  { %13 = vsyncpa [#allocation4], 0 }
   0x4   :  { %15 = vsyncpa [#allocation4 + $0x1], 0 }
   0x5   :  { %16 = vsyncpa [#allocation9], 0 }
   0x6   :  { %18 = vsyncpa [#allocation9 + $0x1], 0  ;;  %s676_s12 = smov 0   ;;  %s678_s13 = smov 0  }
   0x7   :  { %s680_s14 = smov 0   ;;  %s682_s15 = smov 0  }
   0x8 LB: > { %s697_s16 = sadd.s32 4294967295, %s650_s15   ;;  %s415_s17 = sadd.s32 4294967294, %s650_s15   ;;  %s650_s15 = sphi %s682_s15, %s924_s15   ;;  %s646_s14 = sphi %s680_s14, %s923_s14   ;;  %s642_s13 = sphi %s678_s13, %s922_s13   ;;  %s638_s12 = sphi %s676_s12, %s921_s12  }
   0x9   : > { %p44_p0 = scmp.ne.s32.totalorder %s642_s13, %s638_s12  ;;  %p902_p1 = scmp.eq.s32.totalorder %s697_s16, 0 }
   0xa   : > { %p95_p3 = scmp.eq.s32.totalorder %s415_s17, 1  ;;  %p416_p5 = scmp.ge.s32.totalorder %s650_s15, 1 }
   0xb   : > { %p706_p4 = por %p902_p1, %p44_p0  ;;  %p128_p7 = scmp.lt.s32.totalorder %s650_s15, 3 }
   0xc   : > { %p711_p6 = por %p95_p3, %p44_p0  ;;  %s652_s21 = smov [#allocation5]  }
   0xd   : > { %s906_s18 = scalar_select %p706_p4, 1, 0 }
   0xe   : > { %s907_s19 = scalar_select %p711_p6, 1, 0 }
   0xf   : > { %p716_p8 = pnand %p416_p5, %p128_p7  ;;  %s141_s22 = sshll.u32 %s652_s21, 4  ;;  %s142_s22 = int_to_ptr.vmem [resolvable:$true] %s141_s22 }
  0x10   : > { %s724_s23 = sadd.s32 1, %s650_s15   ;;  %s31_s27 = sadd.s32 1, %s646_s14 }
  0x11   : > { %s908_s20 = scalar_select %p716_p8, 1, 0 }
  0x12   : > { %p446_p10 = pneg %p716_p8  ;;  %s28_s25 = ssub.s32 %s650_s15, %s724_s23 }
  0x13   : > { %p734_p12 = scmp.eq.s32.totalorder %s28_s25, 0  ;;  %p38_p13 = scmp.ne.s32.totalorder %s646_s14, %s642_s13 }
  0x14   : > { %p728_p11 = pnand %p446_p10, %p902_p1  ;;  %s509_s28 = scalar_lea.vmem %s142_s22, 128 }
  0x15   : > { %p510_p3 = scmp.ne.s32.totalorder %s142_s22, %s509_s28  ;;  %p517_p9 = scmp.lt.s32.totalorder %s142_s22, %s142_s22 }
  0x16   : > { %p500_p0 = pneg %p728_p11  ;;  %p518_p2 = scmp.lt.s32.totalorder %s509_s28, %s509_s28 }
  0x18   : > { %p512_p5 = pnand %p510_p3, %p500_p0  ;;  %p519_p10 = por %p518_p2, %p517_p9 }
  0x1a   : > { %p513_p7 = pneg %p512_p5 }
  0x1c   : > { %p520_p1 = pnand %p519_p10, %p513_p7 }
  0x1e   : > { %523 = shalt.err (!%p520_p1)
}
  0x1f   : > { %449 = dma.hbm_to_vmem [thread:$0]  (!%p728_p11), %s899_s1, 128, %s142_s22, [#allocation6]  }
  0x20   : > { %s751_s4 = scalar_select %p734_p12, %s646_s14, %s31_s27  }
  0x21   : > { %p39_p1 = scmp.eq.s32.totalorder %s650_s15, 0  ;;  %p911_p2 = scmp.eq.s32.totalorder %s697_s16, 1 }
  0x22   : > { %p462_p0 = scmp.lt.s32.totalorder %s650_s15, 2  ;;  %s152_s6 = sand.u32 1, %s646_s14  }
  0x23   : > { %p759_p9 = por %p911_p2, %p38_p13  ;;  %p40_p3 = por %p39_p1, %p38_p13 }
  0x24   : > { %s419_s7 = sshll.u32 %s152_s6, 3  ;;  %s420_s8 = sshll.u32 %s650_s15, 7 }
  0x25   : > { %s912_s5 = scalar_select %p759_p9, 1, 0 }
  0x26   : > { %s772_s11 = scalar_lea.hbm %s898_s0, %s420_s8  ;;  %s156_s17 = scalar_lea.vmem [#allocation2], %s419_s7 }
  0x27   : > { %s163_s21 = sshll.u32 %s156_s17, 4  ;;  %p774_p11 = pnand %p462_p0, %p40_p3  ;;  %s164_s21 = int_to_ptr.vmem [resolvable:$true] %s163_s21 }
  0x28   : > { %s153_s24 = scalar_lea.sflag [#allocation3], %s152_s6  ;;  %s524_s25 = scalar_lea.hbm %s772_s11, 128 }
  0x29   : > { %p525_p12 = scmp.ne.s32.totalorder %s772_s11, %s524_s25  ;;  %p526_p13 = pneg %p774_p11 }
  0x2a   : > { %s529_s28 = scalar_lea.hbm %s898_s0, 256  ;;  %p530_p10 = scmp.lt.s32.totalorder %s772_s11, %s898_s0 }
  0x2b   : > { %p527_p5 = pnand %p526_p13, %p525_p12  ;;  %p531_p1 = scmp.lt.s32.totalorder %s529_s28, %s524_s25 }
  0x2d   : > { %p528_p7 = pneg %p527_p5  ;;  %p532_p2 = por %p531_p1, %p530_p10 }
  0x2f   : > { %p533_p0 = pnand %p532_p2, %p528_p7 }
  0x31   : > { %536 = shalt.err (!%p533_p0)
}
  0x32   : > { %s537_s7 = scalar_lea.vmem %s164_s21, 128  ;;  %s653_s6 = smov [#allocation2]  }
  0x33   : > { %p538_p3 = scmp.ne.s32.totalorder %s164_s21, %s537_s7  ;;  %s542_s8 = sshll.u32 %s653_s6, 4  ;;  %s543_s8 = int_to_ptr.vmem [resolvable:$false] %s542_s8 }
  0x34   : > { %s544_s9 = scalar_lea.vmem %s543_s8, 256  ;;  %p545_p12 = scmp.lt.s32.totalorder %s164_s21, %s543_s8 }
  0x35   : > { %p540_p6 = pnand %p538_p3, %p526_p13  ;;  %p546_p5 = scmp.lt.s32.totalorder %s544_s9, %s537_s7 }
  0x37   : > { %p541_p9 = pneg %p540_p6  ;;  %p547_p4 = por %p546_p5, %p545_p12 }
  0x39   : > { %p548_p8 = pnand %p547_p4, %p541_p9 }
  0x3b   : > { %551 = shalt.err (!%p548_p8)
}
  0x3c   : > { %453 = dma.hbm_to_vmem [thread:$0]  (!%p774_p11), %s772_s11, 128, %s164_s21, %s153_s24  }
  0x3d   : > { %p914_p7 = scmp.ne.s32.totalorder %s908_s20, 0 }
  0x3e   : > { %s795_s10 = sand.u32 (!%p914_p7), 1, %s642_s13   ;;  %p915_p6 = scmp.ne.s32.totalorder (!%p914_p7), %s906_s18, 0 }
  0x3f   : > { %172 = sbr.rel (%p914_p7) target bundleno = 123 (0x7b), region = 28  ;;  %s422_s17 = sshll.u32 (!%p914_p7), %s795_s10, 3 }
  0x40   : > { %s175_s25 = scalar_lea.sflag (!%p914_p7), [#allocation3], %s795_s10  ;;  %s178_s26 = scalar_lea.vmem (!%p914_p7), [#allocation2], %s422_s17 }
  0x44   : > { %621 = dma.done.wait (%p915_p6), %s175_s25, 128  }
  0x45   : > { %623 = vsyncadd (%p915_p6), %s175_s25, 4294967168  ;;  %p916_p4 = scmp.eq.s32.totalorder %s697_s16, 0 }
  0x47   : > { %625 = dma.done.wait (%p916_p4), [#allocation6], 128   ;;  %p917_p8 = pmov %p916_p4 }
  0x48   : > { %s424_s20 = sshll.u32 %s795_s10, 6  ;;  %v221_v0 = vlaneseq  ;;  %s434_s11 = sshll.u32 %s697_s16, 10  ;;  %v210_v10 = vld [vmem:[%s178_s26] sm:$0xff]  ;;  %v219_v11 = vld [vmem:[#allocation5] sm:$0xff] }
  0x49   : > { %627 = vsyncadd (%p917_p8), [#allocation6], 4294967168  ;;  %s202_s21 = scalar_lea.vmem [#allocation7], %s424_s20  ;;  %s809_s18 = scalar_lea.vmem [#allocation8], %s424_s20 }
  0x4a   : > { %v222_v1 = vshrl.u32 %v221_v0, 7  ;;  %s289_s22 = sshll.u32 %s202_s21, 4  ;;  %s303_s24 = sshll.u32 %s809_s18, 4  ;;  %211 = vst [vmem:[%s202_s21] sm:$0xff] %v210_v10  ;;  %212 = vst [vmem:[%s202_s21 + $0x8] sm:$0xff] %v210_v10  ;;  %s819_s22 = int_to_ptr.vmem [resolvable:$true] %s289_s22  ;;  %s828_s24 = int_to_ptr.vmem [resolvable:$true] %s303_s24 }
  0x4b   : > { %s817_s29 = scalar_lea.hbm %s900_s2, %s434_s11  ;;  %213 = vst [vmem:[%s202_s21 + $0x10] sm:$0xff] %v210_v10  ;;  %214 = vst [vmem:[%s202_s21 + $0x18] sm:$0xff] %v210_v10  ;;  %s826_s6 = scalar_lea.hbm %s901_s3, %s434_s11 }
  0x4c   : > { %v223_v2 = vsub.s32 0, %v222_v1  ;;  %v227_v3 = vsub.s32 1, %v222_v1  ;;  %v231_v4 = vsub.s32 2, %v222_v1  ;;  %v235_v5 = vsub.s32 3, %v222_v1  ;;  %215 = vst [vmem:[%s202_s21 + $0x20] sm:$0xff] %v210_v10  ;;  %216 = vst [vmem:[%s202_s21 + $0x28] sm:$0xff] %v210_v10 }
  0x4d   : > { %v239_v6 = vsub.s32 4, %v222_v1  ;;  %v243_v7 = vsub.s32 5, %v222_v1  ;;  %v247_v8 = vsub.s32 6, %v222_v1  ;;  %v251_v9 = vsub.s32 7, %v222_v1  ;;  %217 = vst [vmem:[%s202_s21 + $0x30] sm:$0xff] %v210_v10  ;;  %218 = vst [vmem:[%s202_s21 + $0x38] sm:$0xff] %v210_v10 }
  0x4e   : > { %v224_v12 = vrot.slane %v219_v11, %v223_v2  ;;  %v228_v13 = vrot.slane %v219_v11, %v227_v3  ;;  %v232_v14 = vrot.slane %v219_v11, %v231_v4  ;;  %v236_v15 = vrot.slane %v219_v11, %v235_v5  ;;  %s270_s8 = scalar_lea.sflag [#allocation4], %s795_s10  ;;  %s552_s9 = scalar_lea.vmem %s819_s22, 1024 }
  0x4f   : > { %v240_v16 = vrot.slane %v219_v11, %v239_v6  ;;  %v244_v17 = vrot.slane %v219_v11, %v243_v7  ;;  %v248_v18 = vrot.slane %v219_v11, %v247_v8  ;;  %v252_v19 = vrot.slane %v219_v11, %v251_v9  ;;  %p553_p9 = scmp.ne.s32.totalorder %s819_s22, %s552_s9  ;;  %p918_p11 = scmp.ne.s32.totalorder %s912_s5, 0 }
  0x50   : > { %s654_s17 = smov [#allocation7]  }
  0x51   : > { %p554_p13 = pnand %p553_p9, %p918_p11  ;;  %s556_s16 = sshll.u32 %s654_s17, 4  ;;  %s557_s16 = int_to_ptr.vmem [resolvable:$false] %s556_s16 }
  0x52   : > { %s558_s25 = scalar_lea.vmem %s557_s16, 2048  ;;  %p559_p1 = scmp.lt.s32.totalorder %s819_s22, %s557_s16 }
  0x53   : > { %p555_p10 = pneg %p554_p13  ;;  %p560_p2 = scmp.lt.s32.totalorder %s558_s25, %s552_s9 }
  0x55   : > { %p561_p0 = por %p560_p2, %p559_p1 }
  0x57   : > { %p562_p3 = pnand %p561_p0, %p555_p10 }
  0x59   : > { %565 = shalt.err (!%p562_p3)
}
  0x5a   : > { %s566_s26 = scalar_lea.hbm %s817_s29, 1024  ;;  %s570_s21 = scalar_lea.hbm %s900_s2, 2048 }
  0x5b   : > { %p567_p12 = scmp.ne.s32.totalorder %s817_s29, %s566_s26  ;;  %p571_p6 = scmp.lt.s32.totalorder %s817_s29, %s900_s2 }
  0x5c   : > { %p572_p4 = scmp.lt.s32.totalorder %s570_s21, %s566_s26 }
  0x5d   : > { %p568_p5 = pnand %p567_p12, %p918_p11 }
  0x5e   : > { %p573_p8 = por %p572_p4, %p571_p6 }
  0x5f   : > { %p569_p7 = pneg %p568_p5 }
  0x61   : > { %p574_p9 = pnand %p573_p8, %p569_p7 }
  0x63   : > { %577 = shalt.err (!%p574_p9)
}
  0x64   : > { %442 = dma.vmem_to_hbm [thread:$0]  (%p918_p11), %s819_s22, 1024, %s817_s29, %s270_s8   ;;  %261 = vst [vmem:[%s809_s18] sm:$0xff] %v224_v12  ;;  %262 = vst [vmem:[%s809_s18 + $0x8] sm:$0xff] %v228_v13 }
  0x65   : > { %263 = vst [vmem:[%s809_s18 + $0x10] sm:$0xff] %v232_v14  ;;  %264 = vst [vmem:[%s809_s18 + $0x18] sm:$0xff] %v236_v15  ;;  %s275_s30 = scalar_lea.sflag [#allocation9], %s795_s10  ;;  %s578_s7 = scalar_lea.vmem %s828_s24, 1024 }
  0x66   : > { %265 = vst [vmem:[%s809_s18 + $0x20] sm:$0xff] %v240_v16  ;;  %266 = vst [vmem:[%s809_s18 + $0x28] sm:$0xff] %v244_v17  ;;  %p579_p13 = scmp.ne.s32.totalorder %s828_s24, %s578_s7  ;;  %s655_s9 = smov [#allocation8]  }
  0x67   : > { %267 = vst [vmem:[%s809_s18 + $0x30] sm:$0xff] %v248_v18  ;;  %268 = vst [vmem:[%s809_s18 + $0x38] sm:$0xff] %v252_v19  ;;  %s582_s17 = sshll.u32 %s655_s9, 4  ;;  %s583_s17 = int_to_ptr.vmem [resolvable:$false] %s582_s17 }
  0x68   : > { %p580_p10 = pnand %p579_p13, %p918_p11  ;;  %s584_s16 = scalar_lea.vmem %s583_s17, 2048 }
  0x69   : > { %p585_p2 = scmp.lt.s32.totalorder %s828_s24, %s583_s17  ;;  %p586_p0 = scmp.lt.s32.totalorder %s584_s16, %s578_s7 }
  0x6a   : > { %p581_p1 = pneg %p580_p10 }
  0x6b   : > { %p587_p3 = por %p586_p0, %p585_p2 }
  0x6d   : > { %p588_p12 = pnand %p587_p3, %p581_p1 }
  0x6f   : > { %591 = shalt.err (!%p588_p12)
}
  0x70   : > { %s592_s22 = scalar_lea.hbm %s826_s6, 1024  ;;  %s596_s29 = scalar_lea.hbm %s901_s3, 2048 }
  0x71   : > { %p593_p5 = scmp.ne.s32.totalorder %s826_s6, %s592_s22  ;;  %p597_p4 = scmp.lt.s32.totalorder %s826_s6, %s901_s3 }
  0x72   : > { %p598_p8 = scmp.lt.s32.totalorder %s596_s29, %s592_s22 }
  0x73   : > { %p594_p7 = pnand %p593_p5, %p918_p11 }
  0x74   : > { %p599_p9 = por %p598_p8, %p597_p4 }
  0x75   : > { %p595_p6 = pneg %p594_p7 }
  0x77   : > { %p600_p13 = pnand %p599_p9, %p595_p6 }
  0x79   : > { %603 = shalt.err (!%p600_p13)
}
  0x7a   : > { %443 = dma.vmem_to_hbm [thread:$0]  (%p918_p11), %s828_s24, 1024, %s826_s6, %s275_s30  }
  0x7b PF: > { %s315_s26 = sand.u32 1, %s638_s12   ;;  %p919_p10 = scmp.ne.s32.totalorder %s907_s19, 0 }
  0x7c   : > { %p920_p1 = scmp.ge.s32.totalorder %s650_s15, 2  ;;  %s316_s20 = scalar_lea.sflag [#allocation4], %s315_s26 }
  0x7e   : > { %p455_p2 = pnand %p920_p1, %p919_p10 }
  0x80   : > { %p456_p0 = pneg %p455_p2 }
  0x82   : > { %629 = dma.done.wait (%p456_p0), %s316_s20, 1024  }
  0x83   : > { %631 = vsyncadd (%p456_p0), %s316_s20, 4294966272  ;;  %s325_s11 = scalar_lea.sflag [#allocation9], %s315_s26 }
  0x84   : > { %633 = dma.done.wait (%p456_p0), %s325_s11, 1024  }
  0x85   : > { %635 = vsyncadd (%p456_p0), %s325_s11, 4294966272  ;;  %p21_p11 = scmp.ge.s32.totalorder %s724_s23, 4   ;;  %s921_s12 = smov %s642_s13 }
  0x86   : > { %s922_s13 = smov %s646_s14  ;;  %s923_s14 = smov %s751_s4 }
  0x87   : > { %s924_s15 = smov %s724_s23  ;;  %23 = sbr.rel (!%p21_p11) target bundleno = 8 (0x8), region = 94 }
  0x8c   :  { %330 = vsyncpa [#allocation3], 1 }
  0x8d   :  { %332 = vsyncpa [#allocation3 + $0x1], 1 }
  0x8e   :  { %333 = vsyncpa [#allocation6], 1 }
  0x8f   :  { %334 = vsyncpa [#allocation4], 1 }
  0x90   :  { %336 = vsyncpa [#allocation4 + $0x1], 1 }
  0x91   :  { %337 = vsyncpa [#allocation9], 1 }
  0x92   :  { %339 = vsyncpa [#allocation9 + $0x1], 1 }

</bundles_post_ra>
